<compile_context>
chip_gen: v7x
topology: tpu7x:2x2x1
jax: 0.10.0
libtpu: 0.0.40
codegen_flags: <defaults>
</compile_context>

<pallas_src>
import functools

import jax
import jax.numpy as jnp
import numpy as np
from jax.experimental import pallas as pl
from jax.experimental.pallas import tpu as pltpu

_NEG_BIG = -1e30  # "minus infinity" that stays NaN-free under x*0 and exp(-|x|)


def _make_stats_kernel(*, s_valid, need_mask, need_dice, need_bce, need_fc,
                       double_sigmoid):
    """Builds the per-row streaming-reduction kernel, specialized on static flags.

    Output columns (rows = (batch, class) slices):
      col 0: sum sigmoid(x)*t   (dice intersection)        [need_dice]
      col 1: sum sigmoid(x)     (dice union, pred part)     [need_dice]
      col 2: sum t              (dice union / targets_fc)   [need_dice or need_fc]
      col 3: sum BCE-with-logits(x, t)                      [need_bce]
      col 4: BCE-with-logits(max_spatial(x), targets_fc)    [need_fc]
    Unused columns are written as zeros.
    """
    need_sumt = need_dice or need_fc
    load_t = need_sumt or need_bce

    def kernel(logits_ref, targets_ref, out_ref, *scratch):
        it = iter(scratch)
        sumt_acc = next(it) if need_sumt else None
        sumpt_acc = next(it) if need_dice else None
        sump_acc = next(it) if need_dice else None
        sumbce_acc = next(it) if need_bce else None
        max_acc = next(it) if need_fc else None

        k = pl.program_id(1)
        nk = pl.num_programs(1)
        tm, ts = logits_ref.shape
        ns = ts // 128

        @pl.when(k == 0)
        def _init():
            if need_sumt:
                sumt_acc[...] = jnp.zeros_like(sumt_acc)
            if need_dice:
                sumpt_acc[...] = jnp.zeros_like(sumpt_acc)
                sump_acc[...] = jnp.zeros_like(sump_acc)
            if need_bce:
                sumbce_acc[...] = jnp.zeros_like(sumbce_acc)
            if need_fc:
                max_acc[...] = jnp.full_like(max_acc, _NEG_BIG)

        x = logits_ref[...].astype(jnp.float32)
        if need_mask:
            # Ragged last spatial tile: zero the contribution of out-of-range lanes.
            col = jax.lax.broadcasted_iota(jnp.int32, (tm, ts), 1)
            valid = col < (s_valid - k * ts)        # scalar threshold per step
            x = jnp.where(valid, x, _NEG_BIG)       # sigmoid -> 0, bce -> 0, never wins max
        if load_t:
            t = targets_ref[...].astype(jnp.float32)
            if need_mask:
                t = jnp.where(valid, t, 0.0)

        # Fold ts lanes into 128-wide partials with VALU-only adds/max; the single
        # cross-lane (XLU) reduction happens once per row tile in the finalize step.
        def _fold(v, op):
            r = v[:, 0:128]
            for j in range(1, ns):
                r = op(r, v[:, j * 128:(j + 1) * 128])
            return r

        _add = lambda a, b: a + b

        if need_dice or need_bce:
            # One shared exp feeds both sigmoid and the stable BCE log term.
            e = jnp.exp(-jnp.abs(x))
        if need_dice:
            inv = pl.reciprocal(1.0 + e, approx=False)
            p = jnp.where(x >= 0.0, inv, e * inv)       # sigmoid(x)
            if double_sigmoid:
                # activation='sigmoid': dice sees sigmoid(sigmoid(x)); p >= 0 so stable.
                p = pl.reciprocal(1.0 + jnp.exp(-p), approx=False)
                if need_mask:
                    p = jnp.where(valid, p, 0.0)        # masked lanes must contribute 0
            sumpt_acc[...] += _fold(p * t, _add)
            sump_acc[...] += _fold(p, _add)
        if need_bce:
            # PyTorch's stable BCEWithLogits: max(x,0) - x*t + log(1 + exp(-|x|))
            bce = jnp.maximum(x, 0.0) - x * t + jnp.log(1.0 + e)
            sumbce_acc[...] += _fold(bce, _add)
        if need_sumt:
            sumt_acc[...] += _fold(t, _add)
        if need_fc:
            max_acc[...] = jnp.maximum(max_acc[...], _fold(x, jnp.maximum))

        @pl.when(k == nk - 1)
        def _finalize():
            zero_col = jnp.zeros((tm, 1), jnp.float32)
            s_t = (jnp.sum(sumt_acc[...], axis=1, keepdims=True)
                   if need_sumt else zero_col)
            s_pt = (jnp.sum(sumpt_acc[...], axis=1, keepdims=True)
                    if need_dice else zero_col)
            s_p = (jnp.sum(sump_acc[...], axis=1, keepdims=True)
                   if need_dice else zero_col)
            s_bce = (jnp.sum(sumbce_acc[...], axis=1, keepdims=True)
                     if need_bce else zero_col)
            if need_fc:
                max_l = jnp.max(max_acc[...], axis=1, keepdims=True)
                t_fc = (s_t > 0.0).astype(jnp.float32)
                e_fc = jnp.exp(-jnp.abs(max_l))
                bce_fc = jnp.maximum(max_l, 0.0) - max_l * t_fc + jnp.log(1.0 + e_fc)
            else:
                bce_fc = zero_col

            # Pack the 5 stats into one lane-dense (tm, 128) block (single vst stream).
            lane = jax.lax.broadcasted_iota(jnp.int32, (tm, 128), 1)
            packed = jnp.where(lane == 0, s_pt, 0.0)
            packed = jnp.where(lane == 1, s_p, packed)
            packed = jnp.where(lane == 2, s_t, packed)
            packed = jnp.where(lane == 3, s_bce, packed)
            packed = jnp.where(lane == 4, bce_fc, packed)
            out_ref[...] = packed

    return kernel


def _run_stats(logits_2d, targets_2d, tm, ts, s_valid, *, need_dice, need_bce,
               need_fc, double_sigmoid):
    bc_arr, s_arr = logits_2d.shape
    grid_r = pl.cdiv(bc_arr, tm)
    grid_s = pl.cdiv(s_arr, ts)
    out_rows = grid_r * tm
    need_mask = (grid_s * ts != s_valid)

    kernel = _make_stats_kernel(
        s_valid=s_valid, need_mask=need_mask, need_dice=need_dice,
        need_bce=need_bce, need_fc=need_fc, double_sigmoid=double_sigmoid)

    need_sumt = need_dice or need_fc
    n_acc = int(need_sumt) + 2 * int(need_dice) + int(need_bce) + int(need_fc)

    return pl.pallas_call(
        kernel,
        grid=(grid_r, grid_s),
        in_specs=[pl.BlockSpec((tm, ts), lambda i, k: (i, k)),
                  pl.BlockSpec((tm, ts), lambda i, k: (i, k))],
        out_specs=pl.BlockSpec((tm, 128), lambda i, k: (i, 0)),
        out_shape=jax.ShapeDtypeStruct((out_rows, 128), jnp.float32),
        scratch_shapes=[pltpu.VMEM((tm, 128), jnp.float32) for _ in range(n_acc)],
        compiler_params=pltpu.CompilerParams(
            dimension_semantics=("parallel", "arbitrary")),
    )(logits_2d, targets_2d)


@functools.partial(jax.jit, static_argnames=("weights", "activation"))
def combo_loss(logits, targets, weights=(0.1, 0.0, 1.0), activation=None):
    """ComboLoss.forward.  weights = (image_cls, pixel_seg_dice, pixel_seg_bce)."""
    assert activation in ("sigmoid", None)
    B, C, H, W = logits.shape
    S = H * W
    BC = B * C

    need_fc = bool(weights[0])
    need_dice = bool(weights[1])
    need_bce = bool(weights[2])
    if not (need_fc or need_dice or need_bce):
        return jnp.float32(0.0)

    lf = logits.reshape(BC, S)   # keep original dtype; cast happens per tile in-kernel
    tf = targets.reshape(BC, S)

    # Rare tiny-spatial case: keep lane dim >= 128 so the (8,128) tiling rules and
    # the in-kernel 128-lane fold always apply (tensor is tiny here, pad is free).
    if S < 128:
        lf = jnp.pad(lf, ((0, 0), (0, 128 - S)))
        tf = jnp.pad(tf, ((0, 0), (0, 128 - S)))
        s_arr = 128
    else:
        s_arr = S

    # --- tile selection: ~2 MiB per input block (fits v5e's 16 MiB scoped default
    #     with 2 inputs x 2 pipeline buffers, and well under v7x's 32 MiB) ---
    TM = BC if BC <= 256 else 256
    itemsize = max(jnp.dtype(lf.dtype).itemsize, jnp.dtype(tf.dtype).itemsize)
    block_budget = 2 * 1024 * 1024
    ts_cap = max(128, (block_budget // (TM * itemsize)) // 128 * 128)
    ts_cap = min(ts_cap, 8192)                      # keep the unrolled lane-fold short
    TS = min(ts_cap, max(128, (s_arr // 128) * 128))

    stats_full = _run_stats(lf, tf, TM, TS, S,
                            need_dice=need_dice, need_bce=need_bce, need_fc=need_fc,
                            double_sigmoid=(activation == "sigmoid"))
    stats = stats_full[:BC]
    s_pt = stats[:, 0]
    s_p = stats[:, 1]
    s_t = stats[:, 2]
    s_bce = stats[:, 3]
    bce_fc = stats[:, 4]

    eps = 1e-9
    loss = jnp.float32(0.0)
    if need_fc:
        loss = loss + weights[0] * jnp.mean(bce_fc)
    if need_dice:
        # Multi-label soft dice: per-(batch, class) score, mean over batch then class
        # == overall mean over the (B, C) grid.
        score = (2.0 * s_pt + eps) / (s_p + s_t + eps)
        loss = loss + weights[1] * jnp.mean(1.0 - score)
    if need_bce:
        loss = loss + weights[2] * (jnp.sum(s_bce) / (BC * S))
    return loss


def _reference_combo_loss(logits, targets, weights=(0.1, 0.0, 1.0), activation=None):
    """Pure-JAX reference mirroring the PyTorch module."""
    B, C, H, W = logits.shape
    x = logits.astype(jnp.float32)
    t = targets.astype(jnp.float32)

    def bce_with_logits(a, b):
        return jnp.mean(jnp.maximum(a, 0.0) - a * b
                        + jnp.log(1.0 + jnp.exp(-jnp.abs(a))))

    summed = t.reshape(B, C, -1).sum(-1)
    targets_fc = (summed > 0).astype(jnp.float32)
    logits_fc = x.reshape(B, C, -1).max(-1)

    loss_fc = weights[0] * bce_with_logits(logits_fc, targets_fc) if weights[0] else 0.0

    if weights[1] or weights[2]:
        eps = 1e-9
        p = jax.nn.sigmoid(x) if activation == "sigmoid" else x
        probs = jax.nn.sigmoid(p)          # SoftDiceLoss applies sigmoid internally
        m1 = probs.reshape(B, C, -1)
        m2 = t.reshape(B, C, -1)
        inter = jnp.sum(m1 * m2, -1)
        union = jnp.sum(m1, -1) + jnp.sum(m2, -1)
        score = (2 * inter + eps) / (union + eps)
        loss_seg_dice = weights[1] * jnp.mean(1 - score)
        loss_seg_bce = weights[2] * bce_with_logits(x, t)
    else:
        loss_seg_dice = 0.0
        loss_seg_bce = 0.0
    return loss_fc + loss_seg_bce + loss_seg_dice


if __name__ == "__main__":
    key = jax.random.PRNGKey(0)
    k1, k2, k3, k4 = jax.random.split(key, 4)

    B, C, H, W = 2, 4, 16, 16
    logits = jax.random.normal(k1, (B, C, H, W), dtype=jnp.float32) * 2.0
    targets = (jax.random.uniform(k2, (B, C, H, W)) > 0.7).astype(jnp.float32)

    # Case 1: module default weights (image BCE + seg BCE, dice weight 0), aligned tiles.
    loss = jax.block_until_ready(combo_loss(logits, targets))
    ref = _reference_combo_loss(logits, targets)
    np.testing.assert_allclose(np.asarray(loss), np.asarray(ref), rtol=1e-5, atol=1e-5)

    # Case 2: all three weights active + ragged spatial dim (in-kernel lane masking).
    H2, W2 = 18, 18
    logits2 = jax.random.normal(k3, (B, C, H2, W2), dtype=jnp.float32) * 2.0
    targets2 = (jax.random.uniform(k4, (B, C, H2, W2)) > 0.7).astype(jnp.float32)
    w_all = (0.1, 0.5, 1.0)
    loss2 = jax.block_until_ready(combo_loss(logits2, targets2, weights=w_all))
    ref2 = _reference_combo_loss(logits2, targets2, weights=w_all)
    np.testing.assert_allclose(np.asarray(loss2), np.asarray(ref2), rtol=1e-5, atol=1e-5)

    # Case 3: activation='sigmoid' (double-sigmoid dice) with seg-BCE disabled.
    w_sig = (0.1, 1.0, 0.0)
    loss3 = jax.block_until_ready(
        combo_loss(logits, targets, weights=w_sig, activation="sigmoid"))
    ref3 = _reference_combo_loss(logits, targets, weights=w_sig, activation="sigmoid")
    np.testing.assert_allclose(np.asarray(loss3), np.asarray(ref3), rtol=1e-5, atol=1e-5)

    # Case 4: bf16 inputs stream through unchanged (cast to f32 happens per tile in-kernel).
    lb = logits.astype(jnp.bfloat16)
    tb = targets.astype(jnp.bfloat16)
    loss4 = jax.block_until_ready(combo_loss(lb, tb, weights=w_all))
    ref4 = _reference_combo_loss(lb, tb, weights=w_all)
    np.testing.assert_allclose(np.asarray(loss4), np.asarray(ref4), rtol=1e-4, atol=1e-4)

    print("KERNEL_OK")
</pallas_src>

<mosaic_0001>
module attributes {stable_mosaic.version = 11 : i64} {
  func.func @kernel(%arg0: i32, %arg1: i32, %arg2: memref<8x256xf32, #tpu.memory_space<vmem>>, %arg3: memref<8x256xf32, #tpu.memory_space<vmem>>, %arg4: memref<8x128xf32, #tpu.memory_space<vmem>>, %arg5: memref<8x128xf32, #tpu.memory_space<vmem>>, %arg6: memref<8x128xf32, #tpu.memory_space<vmem>>, %arg7: memref<8x128xf32, #tpu.memory_space<vmem>>) attributes {dimension_semantics = [#tpu.dimension_semantics<parallel>, #tpu.dimension_semantics<arbitrary>], iteration_bounds = array<i64: 1, 1>, scalar_prefetch = 0 : i64, scratch_operands = 3 : i64, tpu.core_type = #tpu.core_type<tc>, window_params = [{transform_indices = @transform_0, window_bounds = array<i64: 8, 256>}, {transform_indices = @transform_1, window_bounds = array<i64: 8, 256>}, {transform_indices = @transform_2, window_bounds = array<i64: 8, 128>}]} {
    %c0_i32 = arith.constant 0 : i32
    %0 = arith.cmpi eq, %arg1, %c0_i32 : i32
    %1 = arith.extui %0 : i1 to i32
    %c0_i32_0 = arith.constant 0 : i32
    %2 = arith.cmpi ne, %1, %c0_i32_0 : i32
    scf.if %2 {
      %cst_20 = arith.constant 0.000000e+00 : f32
      %38 = vector.broadcast %cst_20 : f32 to vector<8x128xf32>
      %c0_21 = arith.constant 0 : index
      %c0_22 = arith.constant 0 : index
      %39 = vector.load %arg5[%c0_21, %c0_22] : memref<8x128xf32, #tpu.memory_space<vmem>>, vector<8x128xf32>
      tpu.vector_store %arg5[%c0_21, %c0_22], %38 {strides = array<i32>} : memref<8x128xf32, #tpu.memory_space<vmem>>, vector<8x128xf32>,
      %cst_23 = arith.constant 0.000000e+00 : f32
      %40 = vector.broadcast %cst_23 : f32 to vector<8x128xf32>
      %c0_24 = arith.constant 0 : index
      %c0_25 = arith.constant 0 : index
      %41 = vector.load %arg6[%c0_24, %c0_25] : memref<8x128xf32, #tpu.memory_space<vmem>>, vector<8x128xf32>
      tpu.vector_store %arg6[%c0_24, %c0_25], %40 {strides = array<i32>} : memref<8x128xf32, #tpu.memory_space<vmem>>, vector<8x128xf32>,
      %cst_26 = arith.constant -1.000000e+30 : f32
      %42 = vector.broadcast %cst_26 : f32 to vector<8x128xf32>
      %c0_27 = arith.constant 0 : index
      %c0_28 = arith.constant 0 : index
      %43 = vector.load %arg7[%c0_27, %c0_28] : memref<8x128xf32, #tpu.memory_space<vmem>>, vector<8x128xf32>
      tpu.vector_store %arg7[%c0_27, %c0_28], %42 {strides = array<i32>} : memref<8x128xf32, #tpu.memory_space<vmem>>, vector<8x128xf32>,
    } else {
    }
    %c0 = arith.constant 0 : index
    %c0_1 = arith.constant 0 : index
    %3 = vector.load %arg2[%c0, %c0_1] : memref<8x256xf32, #tpu.memory_space<vmem>>, vector<8x256xf32>
    %c0_2 = arith.constant 0 : index
    %c0_3 = arith.constant 0 : index
    %4 = vector.load %arg3[%c0_2, %c0_3] : memref<8x256xf32, #tpu.memory_space<vmem>>, vector<8x256xf32>
    %5 = math.absf %3 : vector<8x256xf32>
    %cst = arith.constant 0.000000e+00 : f32
    %6 = vector.broadcast %cst : f32 to vector<8x256xf32>
    %7 = arith.subf %6, %5 : vector<8x256xf32>
    %8 = math.exp %7 : vector<8x256xf32>
    %cst_4 = arith.constant 0.000000e+00 : f32
    %9 = vector.broadcast %cst_4 : f32 to vector<8x256xf32>
    %10 = arith.maximumf %3, %9 : vector<8x256xf32>
    %11 = arith.mulf %3, %4 : vector<8x256xf32>
    %12 = arith.subf %10, %11 : vector<8x256xf32>
    %cst_5 = arith.constant 1.000000e+00 : f32
    %13 = vector.broadcast %cst_5 : f32 to vector<8x256xf32>
    %14 = arith.addf %13, %8 : vector<8x256xf32>
    %15 = math.log %14 : vector<8x256xf32>
    %16 = arith.addf %12, %15 : vector<8x256xf32>
    %c0_6 = arith.constant 0 : index
    %c0_7 = arith.constant 0 : index
    %17 = vector.load %arg6[%c0_6, %c0_7] : memref<8x128xf32, #tpu.memory_space<vmem>>, vector<8x128xf32>
    %18 = vector.extract_strided_slice %16 {offsets = [0, 0], sizes = [8, 128], strides = [1, 1]} : vector<8x256xf32> to vector<8x128xf32>
    %19 = vector.extract_strided_slice %16 {offsets = [0, 128], sizes = [8, 128], strides = [1, 1]} : vector<8x256xf32> to vector<8x128xf32>
    %20 = arith.addf %18, %19 : vector<8x128xf32>
    %21 = arith.addf %17, %20 : vector<8x128xf32>
    %c0_8 = arith.constant 0 : index
    %c0_9 = arith.constant 0 : index
    %22 = vector.load %arg6[%c0_8, %c0_9] : memref<8x128xf32, #tpu.memory_space<vmem>>, vector<8x128xf32>
    tpu.vector_store %arg6[%c0_8, %c0_9], %21 {strides = array<i32>} : memref<8x128xf32, #tpu.memory_space<vmem>>, vector<8x128xf32>,
    %c0_10 = arith.constant 0 : index
    %c0_11 = arith.constant 0 : index
    %23 = vector.load %arg5[%c0_10, %c0_11] : memref<8x128xf32, #tpu.memory_space<vmem>>, vector<8x128xf32>
    %24 = vector.extract_strided_slice %4 {offsets = [0, 0], sizes = [8, 128], strides = [1, 1]} : vector<8x256xf32> to vector<8x128xf32>
    %25 = vector.extract_strided_slice %4 {offsets = [0, 128], sizes = [8, 128], strides = [1, 1]} : vector<8x256xf32> to vector<8x128xf32>
    %26 = arith.addf %24, %25 : vector<8x128xf32>
    %27 = arith.addf %23, %26 : vector<8x128xf32>
    %c0_12 = arith.constant 0 : index
    %c0_13 = arith.constant 0 : index
    %28 = vector.load %arg5[%c0_12, %c0_13] : memref<8x128xf32, #tpu.memory_space<vmem>>, vector<8x128xf32>
    tpu.vector_store %arg5[%c0_12, %c0_13], %27 {strides = array<i32>} : memref<8x128xf32, #tpu.memory_space<vmem>>, vector<8x128xf32>,
    %c0_14 = arith.constant 0 : index
    %c0_15 = arith.constant 0 : index
    %29 = vector.load %arg7[%c0_14, %c0_15] : memref<8x128xf32, #tpu.memory_space<vmem>>, vector<8x128xf32>
    %30 = vector.extract_strided_slice %3 {offsets = [0, 0], sizes = [8, 128], strides = [1, 1]} : vector<8x256xf32> to vector<8x128xf32>
    %31 = vector.extract_strided_slice %3 {offsets = [0, 128], sizes = [8, 128], strides = [1, 1]} : vector<8x256xf32> to vector<8x128xf32>
    %32 = arith.maximumf %30, %31 : vector<8x128xf32>
    %33 = arith.maximumf %29, %32 : vector<8x128xf32>
    %c0_16 = arith.constant 0 : index
    %c0_17 = arith.constant 0 : index
    %34 = vector.load %arg7[%c0_16, %c0_17] : memref<8x128xf32, #tpu.memory_space<vmem>>, vector<8x128xf32>
    tpu.vector_store %arg7[%c0_16, %c0_17], %33 {strides = array<i32>} : memref<8x128xf32, #tpu.memory_space<vmem>>, vector<8x128xf32>,
    %c0_i32_18 = arith.constant 0 : i32
    %35 = arith.cmpi eq, %arg1, %c0_i32_18 : i32
    %36 = arith.extui %35 : i1 to i32
    %c0_i32_19 = arith.constant 0 : i32
    %37 = arith.cmpi ne, %36, %c0_i32_19 : i32
    scf.if %37 {
      %cst_20 = arith.constant 0.000000e+00 : f32
      %38 = vector.broadcast %cst_20 : f32 to vector<8x1xf32>
      %c0_21 = arith.constant 0 : index
      %c0_22 = arith.constant 0 : index
      %39 = vector.load %arg5[%c0_21, %c0_22] : memref<8x128xf32, #tpu.memory_space<vmem>>, vector<8x128xf32>
      %cst_23 = arith.constant dense<0.000000e+00> : vector<8xf32>
      %40 = vector.multi_reduction <add>, %39, %cst_23 [1] : vector<8x128xf32> to vector<8xf32>
      %41 = vector.shape_cast %40 : vector<8xf32> to vector<8x1xf32>
      %c0_24 = arith.constant 0 : index
      %c0_25 = arith.constant 0 : index
      %42 = vector.load %arg6[%c0_24, %c0_25] : memref<8x128xf32, #tpu.memory_space<vmem>>, vector<8x128xf32>
      %cst_26 = arith.constant dense<0.000000e+00> : vector<8xf32>
      %43 = vector.multi_reduction <add>, %42, %cst_26 [1] : vector<8x128xf32> to vector<8xf32>
      %44 = vector.shape_cast %43 : vector<8xf32> to vector<8x1xf32>
      %c0_27 = arith.constant 0 : index
      %c0_28 = arith.constant 0 : index
      %45 = vector.load %arg7[%c0_27, %c0_28] : memref<8x128xf32, #tpu.memory_space<vmem>>, vector<8x128xf32>
      %cst_29 = arith.constant dense<0xFF800000> : vector<8xf32>
      %46 = vector.multi_reduction <maximumf>, %45, %cst_29 [1] : vector<8x128xf32> to vector<8xf32>
      %47 = vector.shape_cast %46 : vector<8xf32> to vector<8x1xf32>
      %cst_30 = arith.constant 0.000000e+00 : f32
      %48 = vector.broadcast %cst_30 : f32 to vector<8x1xf32>
      %49 = arith.cmpf ogt, %41, %48 : vector<8x1xf32>
      %50 = arith.extui %49 : vector<8x1xi1> to vector<8x1xi32>
      %51 = arith.sitofp %50 : vector<8x1xi32> to vector<8x1xf32>
      %52 = math.absf %47 : vector<8x1xf32>
      %cst_31 = arith.constant 0.000000e+00 : f32
      %53 = vector.broadcast %cst_31 : f32 to vector<8x1xf32>
      %54 = arith.subf %53, %52 : vector<8x1xf32>
      %55 = math.exp %54 : vector<8x1xf32>
      %cst_32 = arith.constant 0.000000e+00 : f32
      %56 = vector.broadcast %cst_32 : f32 to vector<8x1xf32>
      %57 = arith.maximumf %47, %56 : vector<8x1xf32>
      %58 = arith.mulf %47, %51 : vector<8x1xf32>
      %59 = arith.subf %57, %58 : vector<8x1xf32>
      %cst_33 = arith.constant 1.000000e+00 : f32
      %60 = vector.broadcast %cst_33 : f32 to vector<8x1xf32>
      %61 = arith.addf %60, %55 : vector<8x1xf32>
      %62 = math.log %61 : vector<8x1xf32>
      %63 = arith.addf %59, %62 : vector<8x1xf32>
      %64 = tpu.iota {dimensions = array<i32: 1>} : vector<8x128xi32>
      %c0_i32_34 = arith.constant 0 : i32
      %65 = vector.broadcast %c0_i32_34 : i32 to vector<8x128xi32>
      %66 = arith.cmpi eq, %64, %65 : vector<8x128xi32>
      %cst_35 = arith.constant 0.000000e+00 : f32
      %67 = vector.shape_cast %38 : vector<8x1xf32> to vector<8x1xf32>
      %68 = vector.broadcast %67 : vector<8x1xf32> to vector<8x128xf32>
      %69 = vector.broadcast %cst_35 : f32 to vector<8x128xf32>
      %70 = arith.select %66, %68, %69 : vector<8x128xi1>, vector<8x128xf32>
      %c1_i32 = arith.constant 1 : i32
      %71 = vector.broadcast %c1_i32 : i32 to vector<8x128xi32>
      %72 = arith.cmpi eq, %64, %71 : vector<8x128xi32>
      %73 = vector.shape_cast %38 : vector<8x1xf32> to vector<8x1xf32>
      %74 = vector.broadcast %73 : vector<8x1xf32> to vector<8x128xf32>
      %75 = arith.select %72, %74, %70 : vector<8x128xi1>, vector<8x128xf32>
      %c2_i32 = arith.constant 2 : i32
      %76 = vector.broadcast %c2_i32 : i32 to vector<8x128xi32>
      %77 = arith.cmpi eq, %64, %76 : vector<8x128xi32>
      %78 = vector.shape_cast %41 : vector<8x1xf32> to vector<8x1xf32>
      %79 = vector.broadcast %78 : vector<8x1xf32> to vector<8x128xf32>
      %80 = arith.select %77, %79, %75 : vector<8x128xi1>, vector<8x128xf32>
      %c3_i32 = arith.constant 3 : i32
      %81 = vector.broadcast %c3_i32 : i32 to vector<8x128xi32>
      %82 = arith.cmpi eq, %64, %81 : vector<8x128xi32>
      %83 = vector.shape_cast %44 : vector<8x1xf32> to vector<8x1xf32>
      %84 = vector.broadcast %83 : vector<8x1xf32> to vector<8x128xf32>
      %85 = arith.select %82, %84, %80 : vector<8x128xi1>, vector<8x128xf32>
      %c4_i32 = arith.constant 4 : i32
      %86 = vector.broadcast %c4_i32 : i32 to vector<8x128xi32>
      %87 = arith.cmpi eq, %64, %86 : vector<8x128xi32>
      %88 = vector.shape_cast %63 : vector<8x1xf32> to vector<8x1xf32>
      %89 = vector.broadcast %88 : vector<8x1xf32> to vector<8x128xf32>
      %90 = arith.select %87, %89, %85 : vector<8x128xi1>, vector<8x128xf32>
      %c0_36 = arith.constant 0 : index
      %c0_37 = arith.constant 0 : index
      %91 = vector.load %arg4[%c0_36, %c0_37] : memref<8x128xf32, #tpu.memory_space<vmem>>, vector<8x128xf32>
      tpu.vector_store %arg4[%c0_36, %c0_37], %90 {strides = array<i32>} : memref<8x128xf32, #tpu.memory_space<vmem>>, vector<8x128xf32>,
    } else {
    }
    return
  }
  func.func @transform_0(%arg0: i32, %arg1: i32) -> (i32, i32) {
    %c0_i32 = arith.constant 0 : i32
    return %arg0, %arg1 : i32, i32
  }
  func.func @transform_1(%arg0: i32, %arg1: i32) -> (i32, i32) {
    %c0_i32 = arith.constant 0 : i32
    return %arg0, %arg1 : i32, i32
  }
  func.func @transform_2(%arg0: i32, %arg1: i32) -> (i32, i32) {
    %c0_i32 = arith.constant 0 : i32
    %c0_i32_0 = arith.constant 0 : i32
    return %arg0, %c0_i32 : i32, i32
  }
}

</mosaic_0001>

<bundles_post_ra>
// kernel: combo_loss.1
= control target key start
LH: loop header
LB: loop body
LE: loop exit
PB: predicated region body
PF: predicated region fallthrough
CT: control target
= control target key end

     0   :  { %v82_v37 = vlaneseq  ;;  %v109_v38 = vmov 0.0   ;;  %s140_s0 = inlined_call_operand.vmem [shape: f32[8,256], index: 0, kind: input, shape index: {}]   ;;  %s141_s1 = inlined_call_operand.vmem [shape: f32[8,256], index: 1, kind: input, shape index: {}]   ;;  %s142_s2 = inlined_call_operand.vmem [shape: f32[8,128], index: 2, kind: output, shape index: {}]  }
   0x1   :  { %v18_v0 = vld [vmem:[%s140_s0] sm:$0xff]  ;;  %v19_v1 = vld [vmem:[%s140_s0 + $0x8] sm:$0xff] }
   0x2   :  { %v23_v2 = vand.u32 2147483647, %v19_v1  ;;  %v53_v3 = vmax.f32 %v18_v0, %v19_v1  ;;  %v22_v4 = vand.u32 2147483647, %v18_v0  ;;  %v20_v5 = vld [vmem:[%s141_s1] sm:$0xff]  ;;  %v21_v6 = vld [vmem:[%s141_s1 + $0x8] sm:$0xff] }
   0x3   :  { %v49_v12 = vadd.f32 %v21_v6, %v20_v5  ;;  %v32_v17 = vmul.f32 %v20_v5, %v18_v0  ;;  %v30_v18 = vmax.f32 %v18_v0, 0.0  ;;  %v33_v19 = vmul.f32 %v21_v6, %v19_v1 }
   0x4   :  { %v25_v7 = vsub.f32 0.0, %v23_v2  ;;  %v54_v8 = vmax.f32 %v53_v3, -1e+30  ;;  %v24_v9 = vsub.f32 0.0, %v22_v4  ;;  %v31_v20 = vmax.f32 %v19_v1, 0.0 }
   0x5   :  { %v34_v21 = vsub.f32 %v30_v18, %v32_v17  ;;  %v83_v40 = vand.u32 127, %v82_v37 }
   0x6   :  { %v28_v10 = vmul.f32 1.442695, %v25_v7  ;;  %66 = vmax.xlane.f32.xlu0 %v54_v8  ;;  %v26_v11 = vmul.f32 1.442695, %v24_v9  ;;  %v35_v23 = vsub.f32 %v31_v20, %v33_v19 }
   0x7   :  { %vm84_vm1 = vcmp.eq.s32.totalorder %v83_v40, 2  ;;  %vm86_vm2 = vcmp.eq.s32.totalorder %v83_v40, 3  ;;  %vm88_vm3 = vcmp.eq.s32.totalorder %v83_v40, 4 }
   0x8   :  { %97 = vpow2.f32 %v26_v11 }
   0x9   :  { %99 = vpow2.f32 %v28_v10 }
   0xa   :  { %60 = vadd.xlane.f32.xlu0 %v49_v12 }
  0x12   :  { %v98_v13 = vpop.eup %97 }
  0x13   :  { %v100_v14 = vpop.eup %99  ;;  %v36_v15 = vadd.f32 1.0, %v98_v13 }
  0x14   :  { %v37_v16 = vadd.f32 1.0, %v100_v14 }
  0x15   :  { %101 = vlog2.f32 %v36_v15 }
  0x16   :  { %103 = vlog2.f32 %v37_v16 }
  0x1f   :  { %v102_v22 = vpop.eup %101 }
  0x20   :  { %v104_v24 = vpop.eup %103  ;;  %v39_v25 = vmul.f32 0.6931472, %v102_v22 }
  0x21   :  { %v41_v26 = vmul.f32 0.6931472, %v104_v24 }
  0x22   :  { %v42_v27 = vadd.f32 %v39_v25, %v34_v21 }
  0x23   :  { %v43_v28 = vadd.f32 %v41_v26, %v35_v23 }
  0x25   :  { %v45_v29 = vadd.f32 %v43_v28, %v42_v27 }
  0x27   :  { %63 = vadd.xlane.f32.xlu1 %v45_v29 }
  0x93   :  { %v67_v30 = vpop.xlane.xlu0 %66 }
  0x94   :  { %v71_v31 = vand.u32 2147483647, %v67_v30  ;;  %v75_v42 = vmax.f32 %v67_v30, 0.0 }
  0x96   :  { %v72_v32 = vsub.f32 0.0, %v71_v31 }
  0x97   :  { %v61_v36 = vpop.xlane.xlu0 %60 }
  0x98   :  { %v73_v33 = vmul.f32 1.442695, %v72_v32  ;;  %vm68_vm0 = vcmp.gt.f32.partialorder %v61_v36, 0.0  ;;  %v85_v47 = vsel %vm84_vm1, %v61_v36, 0.0 }
  0x99   :  { %v95_v39 = vsel %vm68_vm0, 1.0, %v109_v38 }
  0x9a   :  { %105 = vpow2.f32 %v73_v33  ;;  %v76_v41 = vmul.f32 %v95_v39, %v67_v30 }
  0x9c   :  { %v77_v45 = vsub.f32 %v75_v42, %v76_v41 }
  0xa4   :  { %v106_v34 = vpop.eup %105 }
  0xa5   :  { %v78_v35 = vadd.f32 1.0, %v106_v34 }
  0xa7   :  { %107 = vlog2.f32 %v78_v35 }
  0xb1   :  { %v108_v43 = vpop.eup %107 }
  0xb2   :  { %v80_v44 = vmul.f32 0.6931472, %v108_v43 }
  0xb4   :  { %v81_v46 = vadd.f32 %v80_v44, %v77_v45  ;;  %v64_v48 = vpop.xlane.xlu1 %63 }
  0xb5   :  { %v87_v49 = vsel %vm86_vm2, %v64_v48, %v85_v47 }
  0xb6   :  { %v89_v50 = vsel %vm88_vm3, %v81_v46, %v87_v49 }
  0xb7   :  { %90 = vst [vmem:[%s142_s2] sm:$0xff] %v89_v50 }

</bundles_post_ra>
